<compile_context>
chip_gen: v5e
topology: v5e:2x2
jax: 0.10.0
libtpu: 0.0.40
codegen_flags: <defaults>
</compile_context>

<pallas_src>
import numpy as np
import jax
import jax.numpy as jnp
from jax import lax
from jax.experimental import pallas as pl
from jax.experimental.pallas import tpu as pltpu

BN_EPS = 1e-5
K = 7          # spatial-attention conv kernel size
PAD = K // 2   # padding 3

_CMAT_CACHE = {}


def _conv_matrix(sa_w_np, H, W):
    """Cached host-side build of M (2*H*W, H*W) such that, for flattened
    2-channel maps s = [avg.flat | max.flat], s @ M == conv7x7(cat, sa_w).flat
    with zero padding PAD.  Returns a device (jnp) array."""
    key = (H, W, sa_w_np.tobytes())
    hit = _CMAT_CACHE.get(key)
    if hit is not None:
        return hit
    HW = H * W
    M = np.zeros((2 * HW, HW), np.float32)
    ii, jj = np.meshgrid(np.arange(H), np.arange(W), indexing="ij")
    p_out = (ii * W + jj).ravel()
    for c in range(2):
        for di in range(K):
            for dj in range(K):
                oi, oj = di - PAD, dj - PAD
                si, sj = ii + oi, jj + oj
                valid = ((si >= 0) & (si < H) & (sj >= 0) & (sj < W)).ravel()
                p_in = (si * W + sj).ravel()
                np.add.at(M, (c * HW + p_in[valid], p_out[valid]),
                          float(sa_w_np[0, c, di, dj]))
    cmat = jnp.asarray(M)
    _CMAT_CACHE[key] = cmat
    return cmat


def _device_profile():
    """Conservative per-kernel VMEM budget (under the default scoped limit)
    and whether the chip has 2 TensorCores (v7x)."""
    try:
        kind = jax.devices()[0].device_kind.lower()
    except Exception:
        kind = ""
    is_v5e = ("v5 lite" in kind) or ("v5e" in kind) or ("v5litepod" in kind)
    is_v7 = "v7" in kind
    vmem_budget = (10 << 20) if is_v5e else (20 << 20)
    return vmem_budget, is_v7


def _cbam_kernel(x_ref, w1t_ref, b_ref, w2t_ref, cm_ref, o_ref):
    x = x_ref[...]                                   # (bblk, C, HW) f32, lane-dense
    bblk, C, HW = x.shape

    # ---------------- Channel attention (BN folded into w1t / b) ----------------
    avg = jnp.mean(x, axis=2)                        # (bblk, C)
    mx = jnp.max(x, axis=2)                          # (bblk, C)
    pooled = jnp.concatenate([avg, mx], axis=0)      # (2*bblk, C) -> one MXU pass
    h = jnp.dot(pooled, w1t_ref[...],
                preferred_element_type=jnp.float32)  # (2*bblk, Cr)
    h = jnp.maximum(h + b_ref[...], 0.0)             # folded BN bias + ReLU
    f = jnp.dot(h, w2t_ref[...],
                preferred_element_type=jnp.float32)  # (2*bblk, C)
    ca = jax.nn.sigmoid(f[:bblk] + f[bblk:])         # (bblk, C)

    out1 = x * ca[:, :, None]                        # (bblk, C, HW)

    # -------------- Spatial attention: 7x7 conv as ONE MXU matmul --------------
    avg_s = jnp.mean(out1, axis=1)                   # (bblk, HW)
    max_s = jnp.max(out1, axis=1)                    # (bblk, HW)
    s = jnp.concatenate([avg_s, max_s], axis=-1)     # (bblk, 2*HW) lane-axis concat
    conv = jnp.dot(s, cm_ref[...],
                   preferred_element_type=jnp.float32)  # (bblk, HW)
    sa = jax.nn.sigmoid(conv)

    o_ref[...] = (out1 * sa[:, None, :]).astype(o_ref.dtype)


def cbam_forward(x, params, bblk=None):
    w1, gamma, beta, mean, var, w2, sa_w = params
    B, C, H, W = x.shape
    HW = H * W
    Cr = w1.shape[0]

    # Fold BatchNorm2d (inference mode, running statistics) into the first
    # 1x1 conv:  y = (x @ w1.T) * scale + (beta - scale * mean).
    scale = gamma / jnp.sqrt(var + BN_EPS)           # (Cr,)
    w1t = (scale[:, None] * w1).T                    # (C, Cr)
    bias = (beta - scale * mean).reshape(1, Cr)      # (1, Cr)
    w2t = w2.T                                       # (Cr, C)
    cmat = _conv_matrix(np.asarray(sa_w), H, W)      # (2*HW, HW), cached

    # ---- Batch blocking: size blocks against the scoped-VMEM budget.
    # Live f32 bytes per image in-kernel ~ 6 * C * HW * 4 (double-buffered
    # input + output blocks plus x -> out1 -> final product intermediates),
    # plus the resident conv matrix.
    if bblk is None:
        vmem_budget, two_cores = _device_profile()
        per_img = 6 * C * HW * x.dtype.itemsize
        avail = max(vmem_budget - 2 * int(cmat.size) * 4, per_img)
        bblk = max(1, int(avail) // per_img)
        bblk = min(bblk, B)
        if two_cores and B >= 2:
            # v7x: keep >= 2 grid steps so both TensorCores get work.
            bblk = min(bblk, pl.cdiv(B, 2))
        if bblk >= 8:
            bblk -= bblk % 8                          # sublane / MXU-M friendly
    nsteps = pl.cdiv(B, bblk)
    Bp = nsteps * bblk

    x3 = x.reshape(B, C, HW)                          # lane-dense (HW mult. of 128)
    if Bp != B:
        # Zero-pad the batch instead of degrading bblk to a divisor of B.
        x3 = jnp.pad(x3, ((0, Bp - B), (0, 0), (0, 0)))

    img_spec = pl.BlockSpec((bblk, C, HW), lambda b: (b, 0, 0))

    def full_spec(a):
        return pl.BlockSpec(a.shape, lambda b, _nd=a.ndim: (0,) * _nd)

    out3 = pl.pallas_call(
        _cbam_kernel,
        out_shape=jax.ShapeDtypeStruct((Bp, C, HW), x.dtype),
        grid_spec=pltpu.PrefetchScalarGridSpec(
            num_scalar_prefetch=0,
            grid=(nsteps,),
            in_specs=[
                img_spec,                             # x (blocked over batch)
                full_spec(w1t),                       # folded fc1 weight (C, Cr)
                full_spec(bias),                      # folded BN bias    (1, Cr)
                full_spec(w2t),                       # fc2 weight        (Cr, C)
                full_spec(cmat),                      # conv-as-matmul    (2*HW, HW)
            ],
            out_specs=img_spec,
        ),
        compiler_params=pltpu.CompilerParams(
            dimension_semantics=("parallel",)),
    )(x3, w1t, bias, w2t, cmat)

    if Bp != B:
        out3 = out3[:B]
    return out3.reshape(B, C, H, W)


def cbam_ref(x, params):
    """Pure-JAX reference matching the PyTorch forward (BN in eval mode)."""
    w1, gamma, beta, mean, var, w2, sa_w = params
    hp = lax.Precision.HIGHEST
    avg = jnp.mean(x, axis=(2, 3))                   # (B, C)
    mx = jnp.max(x, axis=(2, 3))                     # (B, C)

    def fc(v):
        h = jnp.dot(v, w1.T, precision=hp)           # (B, Cr)
        h = gamma * (h - mean) / jnp.sqrt(var + BN_EPS) + beta
        h = jnp.maximum(h, 0.0)
        return jnp.dot(h, w2.T, precision=hp)        # (B, C)

    ca = jax.nn.sigmoid(fc(avg) + fc(mx))[:, :, None, None]
    out1 = ca * x
    avg_s = jnp.mean(out1, axis=1, keepdims=True)
    max_s = jnp.max(out1, axis=1, keepdims=True)
    cat = jnp.concatenate([avg_s, max_s], axis=1)    # (B, 2, H, W)
    conv = lax.conv_general_dilated(
        cat, sa_w, window_strides=(1, 1), padding=[(PAD, PAD), (PAD, PAD)],
        dimension_numbers=("NCHW", "OIHW", "NCHW"), precision=hp)
    sa = jax.nn.sigmoid(conv)
    return sa * out1


if __name__ == "__main__":
    B, C, H, W = 2, 32, 16, 16                       # channel=32 so ratio=16 gives Cr=2
    ratio = 16
    Cr = C // ratio

    key = jax.random.PRNGKey(0)
    ks = jax.random.split(key, 8)
    x = jax.random.normal(ks[0], (B, C, H, W), jnp.float32)
    w1 = jax.random.normal(ks[1], (Cr, C), jnp.float32) / jnp.sqrt(float(C))
    w2 = jax.random.normal(ks[2], (C, Cr), jnp.float32) / jnp.sqrt(float(Cr))
    gamma = 1.0 + 0.1 * jax.random.normal(ks[3], (Cr,), jnp.float32)
    beta = 0.1 * jax.random.normal(ks[4], (Cr,), jnp.float32)
    mean = 0.1 * jax.random.normal(ks[5], (Cr,), jnp.float32)
    var = 1.0 + 0.1 * jnp.abs(jax.random.normal(ks[6], (Cr,), jnp.float32))
    sa_w = jax.random.normal(ks[7], (1, 2, K, K), jnp.float32) / jnp.sqrt(2.0 * K * K)

    params = (w1, gamma, beta, mean, var, w2, sa_w)

    out = jax.block_until_ready(cbam_forward(x, params))
    ref = cbam_ref(x, params)
    assert out.shape == (B, C, H, W) and out.dtype == jnp.float32
    err = float(jnp.max(jnp.abs(out - ref)))
    assert jnp.allclose(out, ref, rtol=1e-3, atol=1e-4), err
    print("KERNEL_OK")
</pallas_src>

<mosaic_0001>
module attributes {stable_mosaic.version = 11 : i64} {
  func.func @_cbam_kernel(%arg0: i32, %arg1: memref<2x32x256xf32, #tpu.memory_space<vmem>>, %arg2: memref<32x2xf32, #tpu.memory_space<vmem>>, %arg3: memref<1x2xf32, #tpu.memory_space<vmem>>, %arg4: memref<2x32xf32, #tpu.memory_space<vmem>>, %arg5: memref<512x256xf32, #tpu.memory_space<vmem>>, %arg6: memref<2x32x256xf32, #tpu.memory_space<vmem>>) attributes {dimension_semantics = [#tpu.dimension_semantics<parallel>], iteration_bounds = array<i64: 1>, scalar_prefetch = 0 : i64, scratch_operands = 0 : i64, tpu.core_type = #tpu.core_type<tc>, window_params = [{transform_indices = @transform_0, window_bounds = array<i64: 2, 32, 256>}, {pipeline_mode = #tpu.pipeline_mode<synchronous>, transform_indices = @transform_1, window_bounds = array<i64: 32, 2>}, {pipeline_mode = #tpu.pipeline_mode<synchronous>, transform_indices = @transform_2, window_bounds = array<i64: 1, 2>}, {pipeline_mode = #tpu.pipeline_mode<synchronous>, transform_indices = @transform_3, window_bounds = array<i64: 2, 32>}, {pipeline_mode = #tpu.pipeline_mode<synchronous>, transform_indices = @transform_4, window_bounds = array<i64: 512, 256>}, {transform_indices = @transform_5, window_bounds = array<i64: 2, 32, 256>}]} {
    %c0 = arith.constant 0 : index
    %c0_0 = arith.constant 0 : index
    %c0_1 = arith.constant 0 : index
    %0 = vector.load %arg1[%c0, %c0_0, %c0_1] : memref<2x32x256xf32, #tpu.memory_space<vmem>>, vector<2x32x256xf32>
    %cst = arith.constant dense<0.000000e+00> : vector<2x32xf32>
    %1 = vector.multi_reduction <add>, %0, %cst [2] : vector<2x32x256xf32> to vector<2x32xf32>
    %cst_2 = arith.constant 2.560000e+02 : f32
    %2 = vector.broadcast %cst_2 : f32 to vector<2x32xf32>
    %3 = arith.divf %1, %2 : vector<2x32xf32>
    %cst_3 = arith.constant dense<0xFF800000> : vector<2x32xf32>
    %4 = vector.multi_reduction <maximumf>, %0, %cst_3 [2] : vector<2x32x256xf32> to vector<2x32xf32>
    %5 = tpu.concatenate %3, %4 in 0 : vector<2x32xf32>, vector<2x32xf32> -> vector<4x32xf32>
    %c0_4 = arith.constant 0 : index
    %c0_5 = arith.constant 0 : index
    %6 = vector.load %arg2[%c0_4, %c0_5] : memref<32x2xf32, #tpu.memory_space<vmem>>, vector<32x2xf32>
    %cst_6 = arith.constant dense<0.000000e+00> : vector<4x2xf32>
    %7 = tpu.matmul %5, %6, %cst_6 {dimension_numbers = #tpu.dot_dimension_numbers<[1], [0], [0], [1], [0, 0, 1, 1], [], []>} : vector<4x32xf32>, vector<32x2xf32>, vector<4x2xf32> -> vector<4x2xf32>
    %c0_7 = arith.constant 0 : index
    %c0_8 = arith.constant 0 : index
    %8 = vector.load %arg3[%c0_7, %c0_8] : memref<1x2xf32, #tpu.memory_space<vmem>>, vector<1x2xf32>
    %9 = vector.broadcast %8 : vector<1x2xf32> to vector<4x2xf32>
    %10 = arith.addf %7, %9 : vector<4x2xf32>
    %cst_9 = arith.constant 0.000000e+00 : f32
    %11 = vector.broadcast %cst_9 : f32 to vector<4x2xf32>
    %12 = arith.maximumf %10, %11 : vector<4x2xf32>
    %c0_10 = arith.constant 0 : index
    %c0_11 = arith.constant 0 : index
    %13 = vector.load %arg4[%c0_10, %c0_11] : memref<2x32xf32, #tpu.memory_space<vmem>>, vector<2x32xf32>
    %cst_12 = arith.constant dense<0.000000e+00> : vector<4x32xf32>
    %14 = tpu.matmul %12, %13, %cst_12 {dimension_numbers = #tpu.dot_dimension_numbers<[1], [0], [0], [1], [0, 0, 1, 1], [], []>} : vector<4x2xf32>, vector<2x32xf32>, vector<4x32xf32> -> vector<4x32xf32>
    %15 = vector.extract_strided_slice %14 {offsets = [0, 0], sizes = [2, 32], strides = [1, 1]} : vector<4x32xf32> to vector<2x32xf32>
    %16 = vector.extract_strided_slice %14 {offsets = [2, 0], sizes = [2, 32], strides = [1, 1]} : vector<4x32xf32> to vector<2x32xf32>
    %17 = arith.addf %15, %16 : vector<2x32xf32>
    %18 = arith.negf %17 : vector<2x32xf32>
    %19 = math.exp %18 : vector<2x32xf32>
    %cst_13 = arith.constant 1.000000e+00 : f32
    %20 = vector.broadcast %cst_13 : f32 to vector<2x32xf32>
    %21 = arith.addf %20, %19 : vector<2x32xf32>
    %22 = arith.divf %20, %21 : vector<2x32xf32>
    %23 = vector.shape_cast %22 : vector<2x32xf32> to vector<2x32x1xf32>
    %24 = vector.broadcast %23 : vector<2x32x1xf32> to vector<2x32x256xf32>
    %25 = arith.mulf %0, %24 : vector<2x32x256xf32>
    %cst_14 = arith.constant dense<0.000000e+00> : vector<2x256xf32>
    %26 = vector.multi_reduction <add>, %25, %cst_14 [1] : vector<2x32x256xf32> to vector<2x256xf32>
    %cst_15 = arith.constant 3.200000e+01 : f32
    %27 = vector.broadcast %cst_15 : f32 to vector<2x256xf32>
    %28 = arith.divf %26, %27 : vector<2x256xf32>
    %cst_16 = arith.constant dense<0xFF800000> : vector<2x256xf32>
    %29 = vector.multi_reduction <maximumf>, %25, %cst_16 [1] : vector<2x32x256xf32> to vector<2x256xf32>
    %30 = tpu.concatenate %28, %29 in 1 : vector<2x256xf32>, vector<2x256xf32> -> vector<2x512xf32>
    %c0_17 = arith.constant 0 : index
    %c0_18 = arith.constant 0 : index
    %31 = vector.load %arg5[%c0_17, %c0_18] : memref<512x256xf32, #tpu.memory_space<vmem>>, vector<512x256xf32>
    %cst_19 = arith.constant dense<0.000000e+00> : vector<2x256xf32>
    %32 = tpu.matmul %30, %31, %cst_19 {dimension_numbers = #tpu.dot_dimension_numbers<[1], [0], [0], [1], [0, 0, 1, 1], [], []>} : vector<2x512xf32>, vector<512x256xf32>, vector<2x256xf32> -> vector<2x256xf32>
    %33 = arith.negf %32 : vector<2x256xf32>
    %34 = math.exp %33 : vector<2x256xf32>
    %cst_20 = arith.constant 1.000000e+00 : f32
    %35 = vector.broadcast %cst_20 : f32 to vector<2x256xf32>
    %36 = arith.addf %35, %34 : vector<2x256xf32>
    %37 = arith.divf %35, %36 : vector<2x256xf32>
    %38 = vector.shape_cast %37 : vector<2x256xf32> to vector<2x1x256xf32>
    %39 = vector.broadcast %38 : vector<2x1x256xf32> to vector<2x32x256xf32>
    %40 = arith.mulf %25, %39 : vector<2x32x256xf32>
    %c0_21 = arith.constant 0 : index
    %c0_22 = arith.constant 0 : index
    %c0_23 = arith.constant 0 : index
    %41 = vector.load %arg6[%c0_21, %c0_22, %c0_23] : memref<2x32x256xf32, #tpu.memory_space<vmem>>, vector<2x32x256xf32>
    tpu.vector_store %arg6[%c0_21, %c0_22, %c0_23], %40 {strides = array<i32>} : memref<2x32x256xf32, #tpu.memory_space<vmem>>, vector<2x32x256xf32>,
    return
  }
  func.func @transform_0(%arg0: i32) -> (i32, i32, i32) {
    %c0_i32 = arith.constant 0 : i32
    %c0_i32_0 = arith.constant 0 : i32
    %c0_i32_1 = arith.constant 0 : i32
    return %arg0, %c0_i32, %c0_i32_0 : i32, i32, i32
  }
  func.func @transform_1(%arg0: i32) -> (i32, i32) {
    %c0_i32 = arith.constant 0 : i32
    %c0_i32_0 = arith.constant 0 : i32
    %c0_i32_1 = arith.constant 0 : i32
    return %c0_i32, %c0_i32_0 : i32, i32
  }
  func.func @transform_2(%arg0: i32) -> (i32, i32) {
    %c0_i32 = arith.constant 0 : i32
    %c0_i32_0 = arith.constant 0 : i32
    %c0_i32_1 = arith.constant 0 : i32
    return %c0_i32, %c0_i32_0 : i32, i32
  }
  func.func @transform_3(%arg0: i32) -> (i32, i32) {
    %c0_i32 = arith.constant 0 : i32
    %c0_i32_0 = arith.constant 0 : i32
    %c0_i32_1 = arith.constant 0 : i32
    return %c0_i32, %c0_i32_0 : i32, i32
  }
  func.func @transform_4(%arg0: i32) -> (i32, i32) {
    %c0_i32 = arith.constant 0 : i32
    %c0_i32_0 = arith.constant 0 : i32
    %c0_i32_1 = arith.constant 0 : i32
    return %c0_i32, %c0_i32_0 : i32, i32
  }
  func.func @transform_5(%arg0: i32) -> (i32, i32, i32) {
    %c0_i32 = arith.constant 0 : i32
    %c0_i32_0 = arith.constant 0 : i32
    %c0_i32_1 = arith.constant 0 : i32
    return %arg0, %c0_i32, %c0_i32_0 : i32, i32, i32
  }
}

</mosaic_0001>

<bundles_post_ra>
// kernel: tpu_custom_call.1
= control target key start
LH: loop header
LB: loop body
LE: loop exit
PB: predicated region body
PF: predicated region fallthrough
CT: control target
= control target key end

     0   :  { %10 = vsyncpa [#allocation3], 0  ;;  %s1214_s0 = inlined_call_operand.hbm [shape: f32[2,32,256], index: 0, kind: input, shape index: {}]   ;;  %s1215_s1 = inlined_call_operand.vmem [shape: f32[32,2], index: 1, kind: input, shape index: {}]   ;;  %s1216_s2 = inlined_call_operand.vmem [shape: f32[1,2], index: 2, kind: input, shape index: {}]   ;;  %s1217_s3 = inlined_call_operand.vmem [shape: f32[2,32], index: 3, kind: input, shape index: {}]   ;;  %s1218_s4 = inlined_call_operand.hbm [shape: f32[512,256], index: 4, kind: input, shape index: {}]   ;;  %s1219_s5 = inlined_call_operand.hbm [shape: f32[2,32,256], index: 5, kind: output, shape index: {}]  }
   0x1   :  { %11 = vsyncpa [#allocation6], 0 }
   0x2   :  { %12 = vsyncpa [#allocation4], 0  ;;  %s17_s20 = sshll.u32 %s1214_s0, 4  ;;  %s950_s21 = smov [#allocation2]   ;;  %s18_s20 = int_to_ptr.hbm [resolvable:$true] %s17_s20 }
   0x3   :  { %s19_s22 = sshll.u32 %s950_s21, 4  ;;  %s36_s25 = sshll.u32 %s1218_s4, 4  ;;  %s20_s22 = int_to_ptr.vmem [resolvable:$true] %s19_s22  ;;  %s37_s25 = int_to_ptr.hbm [resolvable:$true] %s36_s25 }
   0x4   :  { %s951_s26 = smov 256   ;;  %s952_s27 = smov 16  }
   0x5   :  { %25 = dma.hbm_to_vmem [thread:$0]  %s18_s20, 2048, %s20_s22, [#allocation3], %s951_s26, %s951_s26, %s952_s27  }
   0x6   :  { %s953_s28 = smov [#allocation5]  }
   0x7   :  { %s38_s29 = sshll.u32 %s953_s28, 4  ;;  %s39_s29 = int_to_ptr.vmem [resolvable:$true] %s38_s29 }
   0x8   :  { %44 = dma.hbm_to_vmem [thread:$0]  %s37_s25, 16384, %s39_s29, [#allocation6], %s951_s26, %s951_s26, %s952_s27  }
   0x9   :  { %944 = dma.done.wait [#allocation3], 2048  }
   0xa   :  { %945 = vsyncadd [#allocation3], 4294965248 }
   0xb   :  { %946 = dma.done.wait [#allocation6], 16384  }
   0xc   :  { %947 = vsyncadd [#allocation6], 4294950912  ;;  %v999_v0 = vld [vmem:[#allocation2 + $0x40] sm:$0xff]  ;;  %v1001_v1 = vld [vmem:[#allocation2 + $0x48] sm:$0xff]  ;;  %v954_v35 = vmov 256.0   ;;  %v140_v51 = vlaneseq  ;;  %vm145_vm1 = vcmask 130112  }
   0xd   :  { %v1003_v2 = vld [vmem:[#allocation2] sm:$0xff]  ;;  %v81_v3 = vadd.f32 %v1001_v1, %v999_v0  ;;  %v1007_v4 = vld [vmem:[#allocation2 + $0x8] sm:$0xff]  ;;  %v1017_v9 = vld [vmem:[#allocation2 + $0x50] sm:$0xff]  ;;  %v120_v25 = vmax.f32 %v999_v0, %v1001_v1  ;;  %856 = vrcp.f32 %v954_v35  ;;  %vm149_vm2 = vcmask 195712   ;;  %s820_s16 = sshll.u32 %s1219_s5, 4  ;;  %s821_s16 = int_to_ptr.hbm [resolvable:$true] %s820_s16 }
   0xe   :  { %v1009_v5 = vld [vmem:[#allocation2 + $0x20] sm:$0xff]  ;;  %v1011_v6 = vld [vmem:[#allocation2 + $0x28] sm:$0xff]  ;;  %v69_v7 = vadd.f32 %v1007_v4, %v1003_v2  ;;  %v1019_v10 = vld [vmem:[#allocation2 + $0x58] sm:$0xff]  ;;  %v108_v24 = vmax.f32 %v1003_v2, %v1007_v4  ;;  %v141_v56 = vand.u32 127, %v140_v51  ;;  %vm153_vm3 = vcmask 261312  }
   0xf   :  { %v75_v8 = vadd.f32 %v1011_v6, %v1009_v5  ;;  %82 = vadd.xlane.f32.xlu1 %v81_v3  ;;  %v1021_v11 = vld [vmem:[#allocation2 + $0x10] sm:$0xff]  ;;  %v1023_v12 = vld [vmem:[#allocation2 + $0x18] sm:$0xff]  ;;  %v1025_v13 = vld [vmem:[#allocation2 + $0x60] sm:$0xff]  ;;  %v84_v15 = vadd.f32 %v1019_v10, %v1017_v9  ;;  %v123_v27 = vmax.f32 %v1017_v9, %v1019_v10  ;;  %v114_v29 = vmax.f32 %v1009_v5, %v1011_v6 }
  0x10   :  { %70 = vadd.xlane.f32.xlu0 %v69_v7  ;;  %v1027_v14 = vld [vmem:[#allocation2 + $0x68] sm:$0xff]  ;;  %v72_v16 = vadd.f32 %v1023_v12, %v1021_v11  ;;  %v1035_v18 = vld [vmem:[#allocation2 + $0x70] sm:$0xff]  ;;  %v1037_v19 = vld [vmem:[#allocation2 + $0x78] sm:$0xff]  ;;  %v111_v26 = vmax.f32 %v1021_v11, %v1023_v12  ;;  %v143_v58 = vadd.s32 4294967288, %v141_v56  ;;  %v147_v62 = vadd.s32 4294967280, %v141_v56 }
  0x11   :  { %76 = vadd.xlane.f32.xlu2 %v75_v8  ;;  %v87_v17 = vadd.f32 %v1027_v14, %v1025_v13  ;;  %v1039_v20 = vld [vmem:[#allocation2 + $0x30] sm:$0xff]  ;;  %v1041_v21 = vld [vmem:[#allocation2 + $0x38] sm:$0xff]  ;;  %v90_v22 = vadd.f32 %v1037_v19, %v1035_v18  ;;  %v126_v28 = vmax.f32 %v1025_v13, %v1027_v14  ;;  %v129_v31 = vmax.f32 %v1035_v18, %v1037_v19  ;;  %v193_v42 = vld [vmem:[%s1215_s1 + $0x8] sm:$0xff] }
  0x12   :  { %v78_v23 = vadd.f32 %v1041_v21, %v1039_v20  ;;  %v117_v30 = vmax.f32 %v1039_v20, %v1041_v21  ;;  %v195_v36 = vld [vmem:[%s1215_s1 + $0x18] sm:$0xff]  ;;  %v194_v41 = vld [vmem:[%s1215_s1 + $0x10] sm:$0xff]  ;;  %v192_v44 = vld [vmem:[%s1215_s1] sm:$0xff]  ;;  %v151_v8 = vadd.s32 4294967272, %v141_v56  ;;  %vm162_vm4 = vcmask 1041409  }
  0x13   :  { %216 = vmatpush.msra.mxu0 %v195_v36  ;;  %v857_v38 = vpop.eup %856  ;;  %vm187_vm5 = vcmask 1043459   ;;  %vm190_vm6 = vcmask 1041408   ;;  %vm200_vm7 = vcmask 261120   ;;  %vm226_vm8 = vcmask 15360  }
  0x14   :  { %v94_v43 = vmul.f32 256.0, %v857_v38  ;;  %vm98_vm0 = vweird.f32 %v857_v38 }
  0x15   :  { %217 = vmatpush.msra.mxu0 %v194_v41 }
  0x16   :  { %v95_v45 = vsub.f32 1.0, %v94_v43 }
  0x17   :  { %85 = vadd.xlane.f32.xlu1 %v84_v15  ;;  %218 = vmatpush.msra.mxu0 %v193_v42 }
  0x18   :  { %73 = vadd.xlane.f32.xlu0 %v72_v16  ;;  %v96_v49 = vmul.f32 %v857_v38, %v95_v45 }
  0x19   :  { %88 = vadd.xlane.f32.xlu2 %v87_v17  ;;  %219 = vmatpush.msra.mxu0 %v192_v44 }
  0x1a   :  { %v97_v50 = vadd.f32 %v857_v38, %v96_v49 }
  0x1c   :  { %v99_v55 = vsel %vm98_vm0, %v857_v38, %v97_v50 }
  0x1f   :  { %91 = vadd.xlane.f32.xlu1 %v90_v22 }
  0x20   :  { %79 = vadd.xlane.f32.xlu0 %v78_v23 }
  0x21   :  { %109 = vmax.xlane.f32.xlu2 %v108_v24 }
  0x27   :  { %121 = vmax.xlane.f32.xlu1 %v120_v25 }
  0x28   :  { %112 = vmax.xlane.f32.xlu0 %v111_v26 }
  0x29   :  { %124 = vmax.xlane.f32.xlu2 %v123_v27 }
  0x2f   :  { %127 = vmax.xlane.f32.xlu1 %v126_v28 }
  0x30   :  { %115 = vmax.xlane.f32.xlu0 %v114_v29 }
  0x31   :  { %118 = vmax.xlane.f32.xlu2 %v117_v30 }
  0x38   :  { %130 = vmax.xlane.f32.xlu0 %v129_v31 }
  0x82   :  { %v83_v32 = vpop.xlane.xlu1 %82 }
  0x83   :  { %v71_v33 = vpop.xlane.xlu0 %70  ;;  %v104_v57 = vmul.f32 %v99_v55, %v83_v32 }
  0x84   :  { %v77_v34 = vpop.xlane.xlu2 %76  ;;  %v100_v61 = vmul.f32 %v99_v55, %v71_v33 }
  0x85   :  { %v155_v63 = vperm.slane %v104_v57, %v141_v56  ;;  %v102_v3 = vmul.f32 %v99_v55, %v77_v34  ;;  %v855_v57 = vld [vmem:[%s1216_s2] ss:$0 sm:$0xff]  ;;  %s956_s2 = smov [#allocation7]  }
  0x86   :  { %v142_v24 = vperm.slane %v100_v61, %v141_v56  ;;  %v278_v61 = vshrl.u32 %v140_v51, 7 }
  0x87   :  { %v148_v30 = vperm.slane %v102_v3, %v147_v62 }
  0x88   :  { %849 = vset.pattern.permute.xlu0 %v278_v61  ;;  %847 = vset.pattern.permute.xlu1 %v278_v61 }
  0x8a   :  { %v86_v37 = vpop.xlane.xlu1 %85 }
  0x8b   :  { %v74_v39 = vpop.xlane.xlu0 %73  ;;  %v105_v59 = vmul.f32 %v99_v55, %v86_v37 }
  0x8c   :  { %v89_v40 = vpop.xlane.xlu2 %88  ;;  %v101_v60 = vmul.f32 %v99_v55, %v74_v39 }
  0x8d   :  { %v106_v7 = vmul.f32 %v99_v55, %v89_v40  ;;  %v156_v16 = vperm.slane %v105_v59, %v143_v58 }
  0x8e   :  { %v144_v17 = vperm.slane %v101_v60, %v143_v58 }
  0x8f   :  { %v158_v31 = vperm.slane %v106_v7, %v147_v62  ;;  %v157_v34 = vsel %vm145_vm1, %v156_v16, %v155_v63 }
  0x90   :  { %v146_v35 = vsel %vm145_vm1, %v144_v17, %v142_v24 }
  0x91   :  { %v159_v42 = vsel %vm149_vm2, %v158_v31, %v157_v34  ;;  %v150_v45 = vsel %vm149_vm2, %v148_v30, %v146_v35  ;;  %v535_v34 = vld [vmem:[#allocation5 + $0x2f0] sm:$0xff] }
  0x92   :  { %v92_v46 = vpop.xlane.xlu1 %91  ;;  %v567_v35 = vld [vmem:[#allocation5 + $0x3f0] sm:$0xff] }
  0x93   :  { %v80_v47 = vpop.xlane.xlu0 %79  ;;  %v107_v22 = vmul.f32 %v99_v55, %v92_v46  ;;  %629 = vmatpush.msrb.mxu0 %v567_v35  ;;  %v543_v35 = vld [vmem:[#allocation5 + $0x330] sm:$0xff] }
  0x94   :  { %v110_v48 = vpop.xlane.xlu2 %109  ;;  %v103_v23 = vmul.f32 %v99_v55, %v80_v47 }
  0x95   :  { %v173_v25 = vperm.slane %v110_v48, %v141_v56  ;;  %v160_v36 = vperm.slane %v107_v22, %v151_v8 }
  0x96   :  { %v152_v37 = vperm.slane %v103_v23, %v151_v8 }
  0x97   :  { %v161_v48 = vsel %vm153_vm3, %v160_v36, %v159_v42  ;;  %v471_v36 = vld [vmem:[#allocation5 + $0xf0] sm:$0xff] }
  0x98   :  { %v154_v47 = vsel %vm153_vm3, %v152_v37, %v150_v45  ;;  %v503_v37 = vld [vmem:[#allocation5 + $0x1f0] sm:$0xff]  ;;  %569 = vmatpush.msra.mxu2 %v471_v36 }
  0x99   :  { %589 = vmatpush.msra.mxu3 %v503_v37  ;;  %v531_v42 = vld [vmem:[#allocation5 + $0x2d0] sm:$0xff] }
  0x9a   :  { %v122_v53 = vpop.xlane.xlu1 %121  ;;  %v499_v45 = vld [vmem:[#allocation5 + $0x1d0] sm:$0xff] }
  0x9b   :  { %v113_v52 = vpop.xlane.xlu0 %112  ;;  %v180_v26 = vperm.slane %v122_v53, %v141_v56  ;;  %v163_v53 = vsel %vm162_vm4, %v161_v48, %v154_v47  ;;  %v225_v56 = vld [vmem:[%s1217_s3] sm:$0x3]  ;;  %v447_v37 = vld [vmem:[#allocation5 + $0x30] sm:$0xff]  ;;  %s818_s3 = sshll.u32 %s956_s2, 4  ;;  %s819_s3 = int_to_ptr.vmem [resolvable:$true] %s818_s3 }
  0x9c   :  { %v125_v54 = vpop.xlane.xlu2 %124  ;;  %v174_v27 = vperm.slane %v113_v52, %v143_v58  ;;  %835 = vmatpush.msk.msra.mxu1 %vm190_vm6, %v225_v56  ;;  %v561_v47 = vld [vmem:[#allocation5 + $0x3c0] sm:$0xff] }
  0x9d   :  { %v181_v28 = vperm.slane %v125_v54, %v143_v58  ;;  %v465_v48 = vld [vmem:[#allocation5 + $0xc0] sm:$0xff] }
  0x9e   :  { %v175_v39 = vsel %vm145_vm1, %v174_v27, %v173_v25  ;;  %609 = vmatpush.msrb.mxu1 %v535_v34  ;;  %v557_v56 = vld [vmem:[#allocation5 + $0x3a0] sm:$0xff]  ;;  %v511_v34 = vld [vmem:[#allocation5 + $0x230] sm:$0xff] }
  0x9f   :  { %v182_v40 = vsel %vm145_vm1, %v181_v28, %v180_v26 }
  0xa2   :  { %v128_v29 = vpop.xlane.xlu1 %127 }
  0xa3   :  { %v116_v15 = vpop.xlane.xlu0 %115  ;;  %v183_v38 = vperm.slane %v128_v29, %v147_v62 }
  0xa4   :  { %v176_v32 = vperm.slane %v116_v15, %v147_v62  ;;  %v119_v33 = vpop.xlane.xlu2 %118  ;;  %v285_v62 = vadd.s32 8, %v278_v61 }
  0xa5   :  { %v178_v41 = vperm.slane %v119_v33, %v151_v8  ;;  %v184_v49 = vsel %vm149_vm2, %v183_v38, %v182_v40  ;;  %v297_v33 = vadd.s32 24, %v278_v61  ;;  %v533_v38 = vld [vmem:[#allocation5 + $0x2e0] sm:$0xff] }
  0xa6   :  { %v177_v43 = vsel %vm149_vm2, %v176_v32, %v175_v39  ;;  %848 = vset.pattern.permute.xlu2 %v285_v62  ;;  %v291_v32 = vadd.s32 16, %v278_v61  ;;  %v565_v39 = vld [vmem:[#allocation5 + $0x3e0] sm:$0xff]  ;;  %610 = vmatpush.msrb.mxu1 %v533_v38  ;;  %v459_v61 = vld [vmem:[#allocation5 + $0x90] sm:$0xff] }
  0xa7   :  { %v179_v50 = vsel %vm153_vm3, %v178_v41, %v177_v43  ;;  %v469_v40 = vld [vmem:[#allocation5 + $0xe0] sm:$0xff]  ;;  %630 = vmatpush.msrb.mxu0 %v565_v39  ;;  %v563_v43 = vld [vmem:[#allocation5 + $0x3d0] sm:$0xff] }
  0xa8   :  { %v501_v41 = vld [vmem:[#allocation5 + $0x1e0] sm:$0xff]  ;;  %570 = vmatpush.msra.mxu2 %v469_v40  ;;  %611 = vmatpush.msrb.mxu1 %v531_v42  ;;  %v491_v62 = vld [vmem:[#allocation5 + $0x190] sm:$0xff] }
  0xa9   :  { %590 = vmatpush.msra.mxu3 %v501_v41  ;;  %631 = vmatpush.msrb.mxu0 %v563_v43  ;;  %v479_v38 = vld [vmem:[#allocation5 + $0x130] sm:$0xff]  ;;  %v509_v39 = vld [vmem:[#allocation5 + $0x220] sm:$0xff] }
  0xaa   :  { %v541_v40 = vld [vmem:[#allocation5 + $0x320] sm:$0xff]  ;;  %v507_v43 = vld [vmem:[#allocation5 + $0x210] sm:$0xff] }
  0xab   :  { %v131_v44 = vpop.xlane.xlu0 %130  ;;  %591 = vmatpush.msra.mxu3 %v499_v45  ;;  %632 = vmatpush.msrb.mxu0 %v561_v47  ;;  %v445_v41 = vld [vmem:[#allocation5 + $0x20] sm:$0xff]  ;;  %v443_v45 = vld [vmem:[#allocation5 + $0x10] sm:$0xff] }
  0xac   :  { %v185_v46 = vperm.slane %v131_v44, %v151_v8  ;;  %v467_v44 = vld [vmem:[#allocation5 + $0xd0] sm:$0xff]  ;;  %v477_v42 = vld [vmem:[#allocation5 + $0x120] sm:$0xff] }
  0xad   :  { %571 = vmatpush.msra.mxu2 %v467_v44  ;;  %v539_v44 = vld [vmem:[#allocation5 + $0x310] sm:$0xff]  ;;  %v505_v47 = vld [vmem:[#allocation5 + $0x200] sm:$0xff] }
  0xae   :  { %v186_v52 = vsel %vm153_vm3, %v185_v46, %v184_v49  ;;  %v529_v46 = vld [vmem:[#allocation5 + $0x2c0] sm:$0xff] }
  0xaf   :  { %v188_v54 = vsel %vm187_vm5, %v186_v52, %v179_v50  ;;  %612 = vmatpush.msrb.mxu1 %v529_v46  ;;  %v497_v49 = vld [vmem:[#allocation5 + $0x1c0] sm:$0xff]  ;;  %v527_v50 = vld [vmem:[#allocation5 + $0x2b0] sm:$0xff]  ;;  %572 = vmatpush.msra.mxu2 %v465_v48 }
  0xb0   :  { %v191_v55 = vsel %vm190_vm6, %v163_v53, %v188_v54  ;;  %592 = vmatpush.msra.mxu3 %v497_v49  ;;  %v559_v52 = vld [vmem:[#allocation5 + $0x3b0] sm:$0xff]  ;;  %v537_v48 = vld [vmem:[#allocation5 + $0x300] sm:$0xff]  ;;  %v536_v49 = vld [vmem:[#allocation5 + $0x2f8] sm:$0xff]  ;;  %vm770_vm6 = vcmask 1040384  }
  0xb1   :  { %834 = vmatmul.msk.f32.vlgmr.msra.gmra.mxu0 %vm200_vm7, %v191_v55  ;;  %v463_v53 = vld [vmem:[#allocation5 + $0xb0] sm:$0xff]  ;;  %613 = vmatpush.msrb.mxu1 %v527_v50  ;;  %v525_v55 = vld [vmem:[#allocation5 + $0x2a0] sm:$0xff]  ;;  %v568_v50 = vld [vmem:[#allocation5 + $0x3f8] sm:$0xff] }
  0xb2   :  { %v495_v54 = vld [vmem:[#allocation5 + $0x1b0] sm:$0xff]  ;;  %633 = vmatpush.msrb.mxu0 %v559_v52  ;;  %573 = vmatpush.msra.mxu2 %v463_v53  ;;  %v441_v52 = vld [vmem:[#allocation5] sm:$0xff] }
  0xb3   :  { %593 = vmatpush.msra.mxu3 %v495_v54  ;;  %614 = vmatpush.msrb.mxu1 %v525_v55  ;;  %v475_v46 = vld [vmem:[#allocation5 + $0x110] sm:$0xff]  ;;  %v473_v53 = vld [vmem:[#allocation5 + $0x100] sm:$0xff]  ;;  %v472_v54 = vld [vmem:[#allocation5 + $0xf8] sm:$0xff] }
  0xb4   :  { %634 = vmatpush.msrb.mxu0 %v557_v56  ;;  %v504_v55 = vld [vmem:[#allocation5 + $0x1f8] sm:$0xff]  ;;  %v534_v56 = vld [vmem:[#allocation5 + $0x2e8] sm:$0xff] }
 0x12e   :  { %v221_v58 = vpop.f32.mrf.mxu0 }
 0x12f   :  { %v222_v59 = vadd.f32 %v855_v57, %v221_v58  ;;  %v461_v57 = vld [vmem:[#allocation5 + $0xa0] sm:$0xff] }
 0x130   :  { %v493_v58 = vld [vmem:[#allocation5 + $0x1a0] sm:$0xff]  ;;  %574 = vmatpush.msra.mxu2 %v461_v57  ;;  %v566_v57 = vld [vmem:[#allocation5 + $0x3e8] sm:$0xff] }
 0x131   :  { %v224_v60 = vmax.f32 %v222_v59, 0.0  ;;  %v523_v59 = vld [vmem:[#allocation5 + $0x290] sm:$0xff]  ;;  %594 = vmatpush.msra.mxu3 %v493_v58  ;;  %v470_v58 = vld [vmem:[#allocation5 + $0xe8] sm:$0xff] }
 0x132   :  { %615 = vmatpush.msrb.mxu1 %v523_v59  ;;  %575 = vmatpush.msra.mxu2 %v459_v61  ;;  %v502_v59 = vld [vmem:[#allocation5 + $0x1e8] sm:$0xff] }
 0x133   :  { %836 = vmatmul.msk.f32.vlgmr.msra.gmra.mxu1 %vm226_vm8, %v224_v60  ;;  %v555_v60 = vld [vmem:[#allocation5 + $0x390] sm:$0xff]  ;;  %595 = vmatpush.msra.mxu3 %v491_v62  ;;  %v564_v62 = vld [vmem:[#allocation5 + $0x3d8] sm:$0xff] }
 0x134   :  { %635 = vmatpush.msrb.mxu0 %v555_v60  ;;  %v532_v60 = vld [vmem:[#allocation5 + $0x2d8] sm:$0xff] }
 0x1b0   :  { %v250_v63 = vpop.f32.mrf.mxu1 }
 0x1b1   :  { %v254_v3 = vrot.slane %v250_v63, 2 }
 0x1b3   :  { %v256_v7 = vadd.f32 %v254_v3, %v250_v63  ;;  %v521_v63 = vld [vmem:[#allocation5 + $0x280] sm:$0xff] }
 0x1b4   :  { %v553_v3 = vld [vmem:[#allocation5 + $0x380] sm:$0xff]  ;;  %616 = vmatpush.msrb.mxu1 %v521_v63  ;;  %v468_v63 = vld [vmem:[#allocation5 + $0xd8] sm:$0xff] }
 0x1b5   :  { %v837_v8 = vmul.f32 -1.442695, %v256_v7  ;;  %v457_v7 = vld [vmem:[#allocation5 + $0x80] sm:$0xff]  ;;  %636 = vmatpush.msrb.mxu0 %v553_v3  ;;  %v500_v3 = vld [vmem:[#allocation5 + $0x1d8] sm:$0xff] }
 0x1b6   :  { %576 = vmatpush.msra.mxu2 %v457_v7  ;;  %v530_v7 = vld [vmem:[#allocation5 + $0x2c8] sm:$0xff] }
 0x1b7   :  { %858 = vpow2.f32 %v837_v8  ;;  %v489_v8 = vld [vmem:[#allocation5 + $0x180] sm:$0xff] }
 0x1b8   :  { %596 = vmatpush.msra.mxu3 %v489_v8  ;;  %v562_v8 = vld [vmem:[#allocation5 + $0x3c8] sm:$0xff] }
 0x1bd   :  { %v859_v15 = vpop.eup %858 }
 0x1be   :  { %v260_v16 = vadd.f32 1.0, %v859_v15  ;;  %v519_v15 = vld [vmem:[#allocation5 + $0x270] sm:$0xff] }
 0x1bf   :  { %617 = vmatpush.msrb.mxu1 %v519_v15  ;;  %v466_v15 = vld [vmem:[#allocation5 + $0xc8] sm:$0xff] }
 0x1c0   :  { %860 = vrcp.f32 %v260_v16  ;;  %v272_v24 = vand.u32 2147483648, %v260_v16  ;;  %v270_v26 = vand.u32 2147483647, %v260_v16  ;;  %vm266_vm10 = vweird.f32 %v260_v16 }
 0x1c2   :  { %v273_v27 = vor.u32 1.1754944e-38, %v272_v24  ;;  %vm271_vm12 = vcmp.eq.f32.partialorder %v270_v26, 8.507059e+37  ;;  %v549_v24 = vld [vmem:[#allocation5 + $0x360] sm:$0xff] }
 0x1c3   :  { %v485_v26 = vld [vmem:[#allocation5 + $0x160] sm:$0xff] }
 0x1c6   :  { %v861_v17 = vpop.eup %860 }
 0x1c7   :  { %v262_v22 = vmul.f32 %v861_v17, %v260_v16  ;;  %vm267_vm9 = vweird.f32 %v861_v17  ;;  %v551_v16 = vld [vmem:[#allocation5 + $0x370] sm:$0xff] }
 0x1c8   :  { %vm268_vm11 = vmor %vm266_vm10, %vm267_vm9  ;;  %637 = vmatpush.msrb.mxu0 %v551_v16  ;;  %v498_v16 = vld [vmem:[#allocation5 + $0x1c8] sm:$0xff] }
 0x1c9   :  { %v263_v23 = vsub.f32 1.0, %v262_v22  ;;  %v487_v22 = vld [vmem:[#allocation5 + $0x170] sm:$0xff] }
 0x1ca   :  { %597 = vmatpush.msra.mxu3 %v487_v22  ;;  %638 = vmatpush.msrb.mxu0 %v549_v24  ;;  %v560_v22 = vld [vmem:[#allocation5 + $0x3b8] sm:$0xff] }
 0x1cb   :  { %v264_v25 = vmul.f32 %v861_v17, %v263_v23  ;;  %v517_v23 = vld [vmem:[#allocation5 + $0x260] sm:$0xff]  ;;  %v496_v24 = vld [vmem:[#allocation5 + $0x1b8] sm:$0xff] }
 0x1cc   :  { %618 = vmatpush.msrb.mxu1 %v517_v23  ;;  %598 = vmatpush.msra.mxu3 %v485_v26  ;;  %v464_v23 = vld [vmem:[#allocation5 + $0xb8] sm:$0xff]  ;;  %v558_v26 = vld [vmem:[#allocation5 + $0x3a8] sm:$0xff] }
 0x1cd   :  { %v265_v51 = vadd.f32 %v861_v17, %v264_v25  ;;  %v453_v25 = vld [vmem:[#allocation5 + $0x60] sm:$0xff] }
 0x1cf   :  { %v269_v28 = vsel %vm268_vm11, %v861_v17, %v265_v51  ;;  %v455_v17 = vld [vmem:[#allocation5 + $0x70] sm:$0xff] }
 0x1d0   :  { %v274_v29 = vsel %vm271_vm12, %v273_v27, %v269_v28  ;;  %577 = vmatpush.msra.mxu2 %v455_v17  ;;  %v515_v51 = vld [vmem:[#allocation5 + $0x250] sm:$0xff]  ;;  %v528_v17 = vld [vmem:[#allocation5 + $0x2b8] sm:$0xff] }
 0x1d1   :  { %v301_v30 = vperm.slane %v274_v29, 1  ;;  %v276_v31 = vperm.slane %v274_v29, 0  ;;  %v547_v27 = vld [vmem:[#allocation5 + $0x350] sm:$0xff]  ;;  %619 = vmatpush.msrb.mxu1 %v515_v51 }
 0x1d2   :  { %578 = vmatpush.msra.mxu2 %v453_v25  ;;  %639 = vmatpush.msrb.mxu0 %v547_v27  ;;  %v451_v28 = vld [vmem:[#allocation5 + $0x50] sm:$0xff]  ;;  %v526_v25 = vld [vmem:[#allocation5 + $0x2a8] sm:$0xff] }
 0x1d3   :  { %306 = vperm.xlu0 %849, %v301_v30   ;;  %287 = vperm.xlu2 %848, %v276_v31   ;;  %v483_v29 = vld [vmem:[#allocation5 + $0x150] sm:$0xff] }
 0x1d4   :  { %281 = vperm.xlu1 %847, %v276_v31   ;;  %579 = vmatpush.msra.mxu2 %v451_v28  ;;  %v462_v28 = vld [vmem:[#allocation5 + $0xa8] sm:$0xff] }
 0x1d5   :  { %599 = vmatpush.msra.mxu3 %v483_v29  ;;  %v494_v29 = vld [vmem:[#allocation5 + $0x1a8] sm:$0xff] }
 0x1db   :  { %312 = vperm.xlu2 %848, %v301_v30   ;;  %854 = vset.pattern.permute.xlu0 %v297_v33 }
 0x1dc   :  { %850 = vset.pattern.permute.xlu1 %v291_v32 }
 0x1e3   :  { %851 = vset.pattern.permute.xlu2 %v291_v32  ;;  %v449_v32 = vld [vmem:[#allocation5 + $0x40] sm:$0xff] }
 0x1e4   :  { %293 = vperm.xlu1 %850, %v276_v31   ;;  %580 = vmatpush.msra.mxu2 %v449_v32  ;;  %v460_v32 = vld [vmem:[#allocation5 + $0x98] sm:$0xff] }
 0x1e6   :  { %581 = vmatpush.msra.mxu2 %v447_v37  ;;  %v522_v37 = vld [vmem:[#allocation5 + $0x288] sm:$0xff] }
 0x1e8   :  { %582 = vmatpush.msra.mxu2 %v445_v41 }
 0x1ea   :  { %583 = vmatpush.msra.mxu2 %v443_v45 }
 0x1eb   :  { %318 = vperm.xlu2 %851, %v301_v30  }
 0x1ec   :  { %852 = vset.pattern.permute.xlu1 %v297_v33  ;;  %584 = vmatpush.msra.mxu2 %v441_v52  ;;  %v454_v52 = vld [vmem:[#allocation5 + $0x68] sm:$0xff] }
 0x1ee   :  { %649 = vmatpush.msrb.mxu2 %v472_v54 }
 0x1f0   :  { %650 = vmatpush.msrb.mxu2 %v470_v58 }
 0x1f2   :  { %651 = vmatpush.msrb.mxu2 %v468_v63 }
 0x1f3   :  { %853 = vset.pattern.permute.xlu2 %v297_v33  ;;  %v481_v33 = vld [vmem:[#allocation5 + $0x140] sm:$0xff] }
 0x1f4   :  { %299 = vperm.xlu1 %852, %v276_v31   ;;  %v545_v31 = vld [vmem:[#allocation5 + $0x340] sm:$0xff]  ;;  %600 = vmatpush.msra.mxu3 %v481_v33  ;;  %v492_v33 = vld [vmem:[#allocation5 + $0x198] sm:$0xff] }
 0x1f5   :  { %640 = vmatpush.msrb.mxu0 %v545_v31  ;;  %652 = vmatpush.msrb.mxu2 %v466_v15  ;;  %v556_v31 = vld [vmem:[#allocation5 + $0x398] sm:$0xff]  ;;  %v450_v15 = vld [vmem:[#allocation5 + $0x48] sm:$0xff] }
 0x1f6   :  { %601 = vmatpush.msra.mxu3 %v479_v38  ;;  %v554_v38 = vld [vmem:[#allocation5 + $0x388] sm:$0xff] }
 0x1f7   :  { %641 = vmatpush.msrb.mxu0 %v543_v35  ;;  %653 = vmatpush.msrb.mxu2 %v464_v23 }
 0x1f8   :  { %602 = vmatpush.msra.mxu3 %v477_v42 }
 0x1f9   :  { %642 = vmatpush.msrb.mxu0 %v541_v40  ;;  %654 = vmatpush.msrb.mxu2 %v462_v28  ;;  %v490_v40 = vld [vmem:[#allocation5 + $0x188] sm:$0xff] }
 0x1fa   :  { %603 = vmatpush.msra.mxu3 %v475_v46 }
 0x1fb   :  { %324 = vperm.xlu2 %853, %v301_v30   ;;  %v513_v30 = vld [vmem:[#allocation5 + $0x240] sm:$0xff]  ;;  %643 = vmatpush.msrb.mxu0 %v539_v44  ;;  %v488_v44 = vld [vmem:[#allocation5 + $0x178] sm:$0xff] }
 0x1fc   :  { %620 = vmatpush.msrb.mxu1 %v513_v30  ;;  %604 = vmatpush.msra.mxu3 %v473_v53  ;;  %v524_v30 = vld [vmem:[#allocation5 + $0x298] sm:$0xff] }
 0x1fd   :  { %644 = vmatpush.msrb.mxu0 %v537_v48  ;;  %655 = vmatpush.msrb.mxu2 %v460_v32  ;;  %v446_v32 = vld [vmem:[#allocation5 + $0x28] sm:$0xff] }
 0x1fe   :  { %621 = vmatpush.msrb.mxu1 %v511_v34  ;;  %669 = vmatpush.msrb.mxu3 %v504_v55 }
 0x1ff   :  { %709 = vmatpush.msra.mxu0 %v568_v50 }
 0x200   :  { %622 = vmatpush.msrb.mxu1 %v509_v39  ;;  %670 = vmatpush.msrb.mxu3 %v502_v59  ;;  %v458_v39 = vld [vmem:[#allocation5 + $0x88] sm:$0xff] }
 0x201   :  { %710 = vmatpush.msra.mxu0 %v566_v57  ;;  %656 = vmatpush.msrb.mxu2 %v458_v39  ;;  %v548_v57 = vld [vmem:[#allocation5 + $0x358] sm:$0xff] }
 0x202   :  { %623 = vmatpush.msrb.mxu1 %v507_v43  ;;  %671 = vmatpush.msrb.mxu3 %v500_v3  ;;  %v552_v43 = vld [vmem:[#allocation5 + $0x378] sm:$0xff] }
 0x203   :  { %711 = vmatpush.msra.mxu0 %v564_v62  ;;  %v955_v62 = vmov 32.0  }
 0x204   :  { %624 = vmatpush.msrb.mxu1 %v505_v47  ;;  %672 = vmatpush.msrb.mxu3 %v498_v16  ;;  %v550_v47 = vld [vmem:[#allocation5 + $0x368] sm:$0xff]  ;;  %862 = vrcp.f32 %v955_v62 }
 0x205   :  { %712 = vmatpush.msra.mxu0 %v562_v8  ;;  %v546_v8 = vld [vmem:[#allocation5 + $0x348] sm:$0xff] }
 0x206   :  { %689 = vmatpush.msra.mxu1 %v536_v49  ;;  %673 = vmatpush.msrb.mxu3 %v496_v24  ;;  %v482_v16 = vld [vmem:[#allocation5 + $0x148] sm:$0xff]  ;;  %v544_v24 = vld [vmem:[#allocation5 + $0x338] sm:$0xff] }
 0x207   :  { %713 = vmatpush.msra.mxu0 %v560_v22 }
 0x208   :  { %690 = vmatpush.msra.mxu1 %v534_v56  ;;  %674 = vmatpush.msrb.mxu3 %v494_v29 }
 0x209   :  { %714 = vmatpush.msra.mxu0 %v558_v26  ;;  %v480_v26 = vld [vmem:[#allocation5 + $0x138] sm:$0xff] }
 0x20a   :  { %691 = vmatpush.msra.mxu1 %v532_v60  ;;  %675 = vmatpush.msrb.mxu3 %v492_v33  ;;  %v452_v60 = vld [vmem:[#allocation5 + $0x58] sm:$0xff]  ;;  %v478_v33 = vld [vmem:[#allocation5 + $0x128] sm:$0xff] }
 0x20b   :  { %715 = vmatpush.msra.mxu0 %v556_v31  ;;  %v542_v31 = vld [vmem:[#allocation5 + $0x328] sm:$0xff] }
 0x20c   :  { %692 = vmatpush.msra.mxu1 %v530_v7  ;;  %676 = vmatpush.msrb.mxu3 %v490_v40 }
 0x20d   :  { %716 = vmatpush.msra.mxu0 %v554_v38 }
 0x20e   :  { %693 = vmatpush.msra.mxu1 %v528_v17  ;;  %677 = vmatpush.msrb.mxu3 %v488_v44  ;;  %v512_v17 = vld [vmem:[#allocation5 + $0x238] sm:$0xff] }
 0x20f   :  { %717 = vmatpush.msra.mxu0 %v552_v43  ;;  %v540_v43 = vld [vmem:[#allocation5 + $0x318] sm:$0xff] }
 0x210   :  { %694 = vmatpush.msra.mxu1 %v526_v25  ;;  %v448_v25 = vld [vmem:[#allocation5 + $0x38] sm:$0xff] }
 0x211   :  { %718 = vmatpush.msra.mxu0 %v550_v47 }
 0x212   :  { %695 = vmatpush.msra.mxu1 %v524_v30  ;;  %v510_v30 = vld [vmem:[#allocation5 + $0x228] sm:$0xff] }
 0x213   :  { %719 = vmatpush.msra.mxu0 %v548_v57 }
 0x214   :  { %696 = vmatpush.msra.mxu1 %v522_v37 }
 0x215   :  { %720 = vmatpush.msra.mxu0 %v546_v8 }
 0x217   :  { %721 = vmatpush.msra.mxu0 %v544_v24 }
 0x219   :  { %722 = vmatpush.msra.mxu0 %v542_v31 }
 0x21b   :  { %723 = vmatpush.msra.mxu0 %v540_v43 }
 0x22d   :  { %v1096_v36 = vpop.permute.xlu2 %287 }
 0x22e   :  { %v1152_v44 = vmul.f32 %v1096_v36, %v1023_v12  ;;  %v538_v12 = vld [vmem:[#allocation5 + $0x308] sm:$0xff] }
 0x22f   :  { %724 = vmatpush.msra.mxu0 %v538_v12 }
 0x235   :  { %v313_v61 = vpop.permute.xlu2 %312 }
 0x236   :  { %v1105_v41 = vmul.f32 %v313_v61, %v1017_v9  ;;  %v1108_v42 = vmul.f32 %v313_v61, %v1019_v10  ;;  %v518_v9 = vld [vmem:[#allocation5 + $0x268] sm:$0xff]  ;;  %v484_v61 = vld [vmem:[#allocation5 + $0x158] sm:$0xff] }
 0x245   :  { %v307_v51 = vpop.permute.xlu0 %306  ;;  %v319_v27 = vpop.permute.xlu2 %318 }
 0x246   :  { %v1099_v34 = vmul.f32 %v307_v51, %v999_v0  ;;  %v1102_v35 = vmul.f32 %v307_v51, %v1001_v1  ;;  %v520_v0 = vld [vmem:[#allocation5 + $0x278] sm:$0xff]  ;;  %v1117_v48 = vmul.f32 %v319_v27, %v1025_v13  ;;  %v1120_v49 = vmul.f32 %v319_v27, %v1027_v14  ;;  %v282_v54 = vpop.permute.xlu1 %281  ;;  %v486_v13 = vld [vmem:[#allocation5 + $0x168] sm:$0xff]  ;;  %v1138_v51 = vpop.eup %862 }
 0x247   :  { %v456_v1 = vld [vmem:[#allocation5 + $0x78] sm:$0xff]  ;;  %697 = vmatpush.msra.mxu1 %v520_v0  ;;  %678 = vmatpush.msrb.mxu3 %v486_v13  ;;  %v1141_v37 = vmul.f32 %v282_v54, %v1003_v2  ;;  %v1144_v38 = vmul.f32 %v282_v54, %v1007_v4  ;;  %v379_v2 = vmul.f32 32.0, %v1138_v51  ;;  %v474_v54 = vld [vmem:[#allocation5 + $0x108] sm:$0xff]  ;;  %vm383_vm13 = vweird.f32 %v1138_v51 }
 0x248   :  { %v360_v45 = vadd.f32 %v1105_v41, %v1099_v34  ;;  %v369_v46 = vadd.f32 %v1108_v42, %v1102_v35  ;;  %v407_v10 = vmax.f32 %v1099_v34, %v1105_v41  ;;  %v416_v53 = vmax.f32 %v1102_v35, %v1108_v42  ;;  %657 = vmatpush.msrb.mxu2 %v456_v1  ;;  %v516_v14 = vld [vmem:[#allocation5 + $0x258] sm:$0xff] }
 0x249   :  { %698 = vmatpush.msra.mxu1 %v518_v9  ;;  %679 = vmatpush.msrb.mxu3 %v484_v61  ;;  %v508_v0 = vld [vmem:[#allocation5 + $0x218] sm:$0xff]  ;;  %v1148_v1 = vmul.f32 %v1096_v36, %v1021_v11  ;;  %v442_v36 = vld [vmem:[#allocation5 + $0x8] sm:$0xff]  ;;  %v398_v13 = vmax.f32 %v1144_v38, %v1152_v44 }
 0x24a   :  { %v361_v58 = vadd.f32 %v360_v45, %v1117_v48  ;;  %v370_v59 = vadd.f32 %v369_v46, %v1120_v49  ;;  %658 = vmatpush.msrb.mxu2 %v454_v52  ;;  %v417_v63 = vmax.f32 %v416_v53, %v1120_v49  ;;  %v444_v4 = vld [vmem:[#allocation5 + $0x18] sm:$0xff] }
 0x24b   :  { %699 = vmatpush.msra.mxu1 %v516_v14  ;;  %680 = vmatpush.msrb.mxu3 %v482_v16  ;;  %v476_v11 = vld [vmem:[#allocation5 + $0x118] sm:$0xff]  ;;  %v380_v14 = vsub.f32 1.0, %v379_v2 }
 0x24c   :  { %659 = vmatpush.msrb.mxu2 %v452_v60 }
 0x24d   :  { %681 = vmatpush.msrb.mxu3 %v480_v26 }
 0x24e   :  { %660 = vmatpush.msrb.mxu2 %v450_v15 }
 0x24f   :  { %682 = vmatpush.msrb.mxu3 %v478_v33 }
 0x250   :  { %661 = vmatpush.msrb.mxu2 %v448_v25 }
 0x251   :  { %683 = vmatpush.msrb.mxu3 %v476_v11 }
 0x252   :  { %662 = vmatpush.msrb.mxu2 %v446_v32 }
 0x253   :  { %684 = vmatpush.msrb.mxu3 %v474_v54 }
 0x254   :  { %663 = vmatpush.msrb.mxu2 %v444_v4 }
 0x255   :  { %v325_v50 = vpop.permute.xlu2 %324 }
 0x256   :  { %v1125_v55 = vmul.f32 %v325_v50, %v1035_v18  ;;  %v1128_v56 = vmul.f32 %v325_v50, %v1037_v19  ;;  %v408_v18 = vmax.f32 %v407_v10, %v1117_v48  ;;  %v514_v19 = vld [vmem:[#allocation5 + $0x248] sm:$0xff]  ;;  %v294_v29 = vpop.permute.xlu1 %293  ;;  %v351_v50 = vadd.f32 %v1152_v44, %v1144_v38  ;;  %664 = vmatpush.msrb.mxu2 %v442_v36 }
 0x257   :  { %700 = vmatpush.msra.mxu1 %v514_v19  ;;  %v1155_v45 = vmul.f32 %v294_v29, %v1009_v5  ;;  %v1159_v47 = vmul.f32 %v294_v29, %v1011_v6  ;;  %v506_v10 = vld [vmem:[#allocation5 + $0x208] sm:$0xff]  ;;  %v342_v5 = vadd.f32 %v1148_v1, %v1141_v37  ;;  %v389_v6 = vmax.f32 %v1141_v37, %v1148_v1 }
 0x258   :  { %v362_v3 = vadd.f32 %v361_v58, %v1125_v55  ;;  %v371_v7 = vadd.f32 %v370_v59, %v1128_v56  ;;  %v409_v22 = vmax.f32 %v408_v18, %v1125_v55  ;;  %v418_v23 = vmax.f32 %v417_v63, %v1128_v56 }
 0x259   :  { %701 = vmatpush.msra.mxu1 %v512_v17  ;;  %v343_v59 = vadd.f32 %v342_v5, %v1155_v45  ;;  %v352_v60 = vadd.f32 %v351_v50, %v1159_v47  ;;  %v390_v62 = vmax.f32 %v389_v6, %v1155_v45  ;;  %v399_v18 = vmax.f32 %v398_v13, %v1159_v47 }
 0x25a   :  { %v363_v27 = vrot.slane %v362_v3, 4  ;;  %v372_v28 = vrot.slane %v371_v7, 4  ;;  %v410_v39 = vrot.slane %v409_v22, 4  ;;  %v419_v40 = vrot.slane %v418_v23, 4 }
 0x25b   :  { %702 = vmatpush.msra.mxu1 %v510_v30 }
 0x25c   :  { %v364_v46 = vadd.f32 %v363_v27, %v362_v3  ;;  %v373_v9 = vadd.f32 %v372_v28, %v371_v7  ;;  %v411_v52 = vmax.f32 %v409_v22, %v410_v39  ;;  %v420_v53 = vmax.f32 %v418_v23, %v419_v40 }
 0x25d   :  { %703 = vmatpush.msra.mxu1 %v508_v0  ;;  %v381_v23 = vmul.f32 %v1138_v51, %v380_v14 }
 0x25e   :  { %v365_v57 = vrot.slane %v364_v46, 2  ;;  %v374_v58 = vrot.slane %v373_v9, 2  ;;  %v412_v3 = vrot.slane %v411_v52, 2  ;;  %v421_v7 = vrot.slane %v420_v53, 2 }
 0x25f   :  { %704 = vmatpush.msra.mxu1 %v506_v10  ;;  %v382_v39 = vadd.f32 %v1138_v51, %v381_v23 }
 0x260   :  { %v366_v22 = vadd.f32 %v365_v57, %v364_v46  ;;  %v375_v24 = vadd.f32 %v374_v58, %v373_v9  ;;  %v413_v27 = vmax.f32 %v411_v52, %v412_v3  ;;  %v422_v28 = vmax.f32 %v420_v53, %v421_v7 }
 0x261   :  { %v384_v50 = vsel %vm383_vm13, %v1138_v51, %v382_v39 }
 0x262   :  { %v367_v33 = vrot.slane %v366_v22, 1  ;;  %v376_v40 = vrot.slane %v375_v24, 1  ;;  %v414_v46 = vrot.slane %v413_v27, 1  ;;  %v423_v9 = vrot.slane %v422_v28, 1 }
 0x264   :  { %v368_v5 = vadd.f32 %v367_v33, %v366_v22  ;;  %v377_v52 = vadd.f32 %v376_v40, %v375_v24  ;;  %v415_v14 = vmax.f32 %v413_v27, %v414_v46  ;;  %v424_v57 = vmax.f32 %v422_v28, %v423_v9 }
 0x266   :  { %v300_v61 = vpop.permute.xlu1 %299 }
 0x267   :  { %v1174_v19 = vmul.f32 %v300_v61, %v1039_v20  ;;  %v1177_v63 = vmul.f32 %v300_v61, %v1041_v21 }
 0x269   :  { %v344_v8 = vadd.f32 %v343_v59, %v1174_v19  ;;  %v353_v15 = vadd.f32 %v352_v60, %v1177_v63  ;;  %v391_v16 = vmax.f32 %v390_v62, %v1174_v19  ;;  %v400_v17 = vmax.f32 %v399_v18, %v1177_v63 }
 0x26a   :  { %v387_v62 = vmul.f32 %v384_v50, %v368_v5  ;;  %v388_v18 = vmul.f32 %v384_v50, %v377_v52 }
 0x26b   :  { %v345_v20 = vrot.slane %v344_v8, 4  ;;  %v354_v25 = vrot.slane %v353_v15, 4  ;;  %v392_v26 = vrot.slane %v391_v16, 4  ;;  %v401_v21 = vrot.slane %v400_v17, 4 }
 0x26d   :  { %v346_v29 = vadd.f32 %v345_v20, %v344_v8  ;;  %v355_v30 = vadd.f32 %v354_v25, %v353_v15  ;;  %v393_v31 = vmax.f32 %v391_v16, %v392_v26  ;;  %v402_v32 = vmax.f32 %v400_v17, %v401_v21 }
 0x26f   :  { %v347_v0 = vrot.slane %v346_v29, 2  ;;  %v356_v43 = vrot.slane %v355_v30, 2  ;;  %v394_v2 = vrot.slane %v393_v31, 2  ;;  %v403_v4 = vrot.slane %v402_v32, 2 }
 0x271   :  { %v395_v11 = vmax.f32 %v393_v31, %v394_v2  ;;  %v404_v10 = vmax.f32 %v402_v32, %v403_v4  ;;  %v348_v12 = vadd.f32 %v347_v0, %v346_v29  ;;  %v357_v36 = vadd.f32 %v356_v43, %v355_v30 }
 0x273   :  { %v396_v53 = vrot.slane %v395_v11, 1  ;;  %v405_v54 = vrot.slane %v404_v10, 1  ;;  %v349_v6 = vrot.slane %v348_v12, 1  ;;  %v358_v13 = vrot.slane %v357_v36, 1 }
 0x275   :  { %v397_v58 = vmax.f32 %v395_v11, %v396_v53  ;;  %v406_v59 = vmax.f32 %v404_v10, %v405_v54  ;;  %v350_v60 = vadd.f32 %v349_v6, %v348_v12  ;;  %v359_v61 = vadd.f32 %v358_v13, %v357_v36 }
 0x277   :  { %v437_v3 = vsel %vm162_vm4, %v415_v14, %v397_v58  ;;  %v438_v7 = vsel %vm162_vm4, %v424_v57, %v406_v59  ;;  %v385_v8 = vmul.f32 %v384_v50, %v350_v60  ;;  %v386_v15 = vmul.f32 %v384_v50, %v359_v61 }
 0x278   :  { %625 = vmatmul.f32.vlgmr.msrb.gmra.mxu1 %v437_v3  ;;  %645 = vmatmul.f32.vlgmr.msrb.gmra.mxu0 %v438_v7 }
 0x279   :  { %v429_v51 = vsel %vm162_vm4, %v387_v62, %v385_v8  ;;  %v430_v16 = vsel %vm162_vm4, %v388_v18, %v386_v15 }
 0x27a   :  { %585 = vmatmul.f32.vlgmr.msra.gmra.mxu2 %v429_v51  ;;  %605 = vmatmul.f32.vlgmr.msra.gmra.mxu3 %v430_v16 }
 0x280   :  { %705 = vmatmul.f32.vlgmr.msra.gmra.mxu1 %v437_v3  ;;  %725 = vmatmul.f32.vlgmr.msra.gmra.mxu0 %v438_v7 }
 0x282   :  { %665 = vmatmul.f32.vlgmr.msrb.gmra.mxu2 %v429_v51  ;;  %685 = vmatmul.f32.vlgmr.msrb.gmra.mxu3 %v430_v16 }
 0x2f5   :  { %v626_v17 = vpop.f32.mrf.mxu1  ;;  %v646_v20 = vpop.f32.mrf.mxu0 }
 0x2fd   :  { %v586_v22 = vpop.f32.mrf.mxu2  ;;  %v606_v23 = vpop.f32.mrf.mxu3 }
 0x2fe   :  { %v607_v24 = vadd.f32 %v606_v23, %v586_v22  ;;  %v706_v30 = vpop.f32.mrf.mxu1  ;;  %v726_v32 = vpop.f32.mrf.mxu0 }
 0x300   :  { %v627_v25 = vadd.f32 %v626_v17, %v607_v24 }
 0x302   :  { %v647_v26 = vadd.f32 %v646_v20, %v627_v25 }
 0x304   :  { %v838_v21 = vmul.f32 -1.442695, %v647_v26 }
 0x305   :  { %v666_v27 = vpop.f32.mrf.mxu2  ;;  %v686_v28 = vpop.f32.mrf.mxu3 }
 0x306   :  { %864 = vpow2.f32 %v838_v21  ;;  %v687_v29 = vadd.f32 %v686_v28, %v666_v27 }
 0x308   :  { %v707_v31 = vadd.f32 %v706_v30, %v687_v29 }
 0x30a   :  { %v727_v33 = vadd.f32 %v726_v32, %v707_v31 }
 0x30c   :  { %v865_v39 = vpop.eup %864  ;;  %v839_v40 = vmul.f32 -1.442695, %v727_v33 }
 0x30d   :  { %v735_v0 = vadd.f32 1.0, %v865_v39 }
 0x30e   :  { %866 = vpow2.f32 %v839_v40 }
 0x30f   :  { %868 = vrcp.f32 %v735_v0  ;;  %vm742_vm0 = vweird.f32 %v735_v0  ;;  %v748_v54 = vand.u32 2147483648, %v735_v0  ;;  %v746_v6 = vand.u32 2147483647, %v735_v0 }
 0x311   :  { %v749_v59 = vor.u32 1.1754944e-38, %v748_v54  ;;  %vm747_vm7 = vcmp.eq.f32.partialorder %v746_v6, 8.507059e+37 }
 0x314   :  { %v867_v43 = vpop.eup %866 }
 0x315   :  { %v869_v2 = vpop.eup %868  ;;  %v736_v4 = vadd.f32 1.0, %v867_v43 }
 0x316   :  { %v738_v46 = vmul.f32 %v869_v2, %v735_v0  ;;  %vm743_vm14 = vweird.f32 %v869_v2 }
 0x317   :  { %870 = vrcp.f32 %v736_v4  ;;  %v763_v5 = vand.u32 2147483648, %v736_v4  ;;  %v761_v53 = vand.u32 2147483647, %v736_v4  ;;  %vm744_vm1 = vmor %vm742_vm0, %vm743_vm14  ;;  %vm757_vm2 = vweird.f32 %v736_v4 }
 0x318   :  { %v739_v9 = vsub.f32 1.0, %v738_v46 }
 0x319   :  { %v764_v14 = vor.u32 1.1754944e-38, %v763_v5  ;;  %vm762_vm5 = vcmp.eq.f32.partialorder %v761_v53, 8.507059e+37 }
 0x31a   :  { %v740_v10 = vmul.f32 %v869_v2, %v739_v9 }
 0x31c   :  { %v741_v50 = vadd.f32 %v869_v2, %v740_v10 }
 0x31d   :  { %v871_v11 = vpop.eup %870 }
 0x31e   :  { %v753_v12 = vmul.f32 %v871_v11, %v736_v4  ;;  %vm758_vm15 = vweird.f32 %v871_v11  ;;  %v745_v57 = vsel %vm744_vm1, %v869_v2, %v741_v50 }
 0x31f   :  { %vm759_vm3 = vmor %vm757_vm2, %vm758_vm15  ;;  %v750_v62 = vsel %vm747_vm7, %v749_v59, %v745_v57 }
 0x320   :  { %v754_v36 = vsub.f32 1.0, %v753_v12 }
 0x322   :  { %v755_v52 = vmul.f32 %v871_v11, %v754_v36 }
 0x324   :  { %v756_v13 = vadd.f32 %v871_v11, %v755_v52 }
 0x326   :  { %v760_v58 = vsel %vm759_vm3, %v871_v11, %v756_v13 }
 0x327   :  { %v765_v60 = vsel %vm762_vm5, %v764_v14, %v760_v58 }
 0x328   :  { %v769_v61 = vrot.slane %v765_v60, 7 }
 0x32a   :  { %v771_v18 = vsel %vm770_vm6, %v750_v62, %v769_v61  ;;  %v772_v3 = vsel %vm162_vm4, %v750_v62, %v769_v61 }
 0x32b   :  { %v773_v7 = vrot.slane %v772_v3, 1  ;;  %v774_v8 = vperm.slane %v771_v18, 0  ;;  %v775_v15 = vperm.slane %v771_v18, 1 }
 0x32d   :  { %v782_v51 = vmul.f32 %v774_v8, %v1141_v37  ;;  %v783_v16 = vmul.f32 %v775_v15, %v1144_v38  ;;  %v784_v17 = vmul.f32 %v774_v8, %v1148_v1  ;;  %v785_v22 = vmul.f32 %v775_v15, %v1152_v44 }
 0x32e   :  { %v776_v23 = vperm.slane %v773_v7, 0  ;;  %v786_v24 = vmul.f32 %v774_v8, %v1155_v45  ;;  %v777_v20 = vperm.slane %v773_v7, 1  ;;  %v787_v25 = vmul.f32 %v775_v15, %v1159_v47 }
 0x32f   :  { %798 = vst [vmem:[#allocation7] sm:$0xff] %v782_v51  ;;  %v788_v26 = vmul.f32 %v774_v8, %v1174_v19  ;;  %v789_v21 = vmul.f32 %v775_v15, %v1177_v63 }
 0x330   :  { %799 = vst [vmem:[#allocation7 + $0x8] sm:$0xff] %v783_v16  ;;  %v790_v37 = vmul.f32 %v776_v23, %v1099_v34  ;;  %v791_v38 = vmul.f32 %v777_v20, %v1102_v35  ;;  %v792_v1 = vmul.f32 %v776_v23, %v1105_v41  ;;  %v793_v44 = vmul.f32 %v777_v20, %v1108_v42 }
 0x331   :  { %800 = vst [vmem:[#allocation7 + $0x10] sm:$0xff] %v784_v17  ;;  %v794_v45 = vmul.f32 %v776_v23, %v1117_v48  ;;  %v795_v47 = vmul.f32 %v777_v20, %v1120_v49  ;;  %v796_v19 = vmul.f32 %v776_v23, %v1125_v55  ;;  %v797_v34 = vmul.f32 %v777_v20, %v1128_v56 }
 0x332   :  { %801 = vst [vmem:[#allocation7 + $0x18] sm:$0xff] %v785_v22 }
 0x333   :  { %802 = vst [vmem:[#allocation7 + $0x20] sm:$0xff] %v786_v24 }
 0x334   :  { %803 = vst [vmem:[#allocation7 + $0x28] sm:$0xff] %v787_v25 }
 0x335   :  { %804 = vst [vmem:[#allocation7 + $0x30] sm:$0xff] %v788_v26 }
 0x336   :  { %805 = vst [vmem:[#allocation7 + $0x38] sm:$0xff] %v789_v21 }
 0x337   :  { %806 = vst [vmem:[#allocation7 + $0x40] sm:$0xff] %v790_v37 }
 0x338   :  { %807 = vst [vmem:[#allocation7 + $0x48] sm:$0xff] %v791_v38 }
 0x339   :  { %808 = vst [vmem:[#allocation7 + $0x50] sm:$0xff] %v792_v1 }
 0x33a   :  { %809 = vst [vmem:[#allocation7 + $0x58] sm:$0xff] %v793_v44 }
 0x33b   :  { %810 = vst [vmem:[#allocation7 + $0x60] sm:$0xff] %v794_v45 }
 0x33c   :  { %811 = vst [vmem:[#allocation7 + $0x68] sm:$0xff] %v795_v47 }
 0x33d   :  { %812 = vst [vmem:[#allocation7 + $0x70] sm:$0xff] %v796_v19 }
 0x33e   :  { %813 = vst [vmem:[#allocation7 + $0x78] sm:$0xff] %v797_v34 }
 0x33f   :  { %826 = dma.vmem_to_hbm [thread:$0]  %s819_s3, 2048, %s821_s16, [#allocation4], %s951_s26, %s951_s26, %s952_s27  }
 0x340   :  { %948 = dma.done.wait [#allocation4], 2048  }
 0x341   :  { %949 = vsyncadd [#allocation4], 4294965248 }
 0x342   :  { %831 = vsyncpa [#allocation3], 1 }
 0x343   :  { %832 = vsyncpa [#allocation6], 1 }
 0x344   :  { %833 = vsyncpa [#allocation4], 1 }

</bundles_post_ra>
